<compile_context>
chip_gen: v5e
topology: v5e:2x2
jax: 0.10.0
libtpu: 0.0.40
codegen_flags: <defaults>
</compile_context>

<pallas_src>
import functools

import jax
import jax.numpy as jnp
from jax.experimental import pallas as pl
from jax.experimental.pallas import tpu as pltpu


# ----------------------------------------------------------------------------
# Spectral normalization of the conv weight (tiny glue; 1 power iteration,
# matching torch.nn.utils.spectral_norm defaults).
# ----------------------------------------------------------------------------
def spectral_norm_weight(w, u0, n_power_iterations=1, eps=1e-12):
    co = w.shape[0]
    w_mat = w.reshape(co, -1)                       # (Co, Ci*kh*kw)
    u = u0 / jnp.maximum(jnp.linalg.norm(u0), eps)
    v = None
    for _ in range(n_power_iterations):
        v = w_mat.T @ u
        v = v / jnp.maximum(jnp.linalg.norm(v), eps)
        u = w_mat @ v
        u = u / jnp.maximum(jnp.linalg.norm(u), eps)
    sigma = u @ (w_mat @ v)
    return w / sigma
    # TODO(synk): PyTorch updates the `u` buffer in-place every forward; we treat
    # u0 as a pure input (inference semantics) and do not return the new u.


def _round_up(x, m):
    return (x + m - 1) // m * m


# ----------------------------------------------------------------------------
# Pallas kernel: fused conv (sum of per-tap matmuls) + bias + LeakyReLU(0.2).
#
#   x_ref: (1, Tb, Ci, Lx)  flattened-spatial input buffer(s) for this batch
#   w_ref: (T,  Co, Ci)     per-tap weight matrices (spectral-normalized)
#   b_ref: (Co, 1)          bias
#   o_ref: (1, Co, L)       lane-dense output tile (Co sublanes x L lanes)
#
# tap_buf[t] / tap_off[t] are STATIC Python ints: which buffer and which flat
# offset tap t reads its (Ci, L) window from (fully unrolled at trace time).
# ----------------------------------------------------------------------------
def _sn_conv_lrelu_kernel(x_ref, w_ref, b_ref, o_ref, *,
                          tap_buf, tap_off, out_len, negative_slope):
    co = w_ref.shape[1]
    # Start the accumulator at the (broadcast) bias: saves a zeros init and a
    # separate full-tile add at the end.
    acc = jnp.broadcast_to(b_ref[...].astype(jnp.float32), (co, out_len))
    for t in range(len(tap_off)):
        xb = x_ref[0, tap_buf[t], :, :]                 # (Ci, Lx) aligned load
        xs = xb[:, tap_off[t]:tap_off[t] + out_len]     # (Ci, L) static shifted window
        acc = acc + jnp.dot(w_ref[t, :, :], xs,
                            preferred_element_type=jnp.float32)
    # LeakyReLU(slope in (0,1)):  max(x, slope*x)  -> 2 VPU ops.
    act = jnp.maximum(acc, negative_slope * acc)
    o_ref[0, :, :] = act.astype(o_ref.dtype)


# ----------------------------------------------------------------------------
# Wrapper
# ----------------------------------------------------------------------------
def sn_conv2d_with_activation(x, weight, bias, u0, *, stride=1, padding=0,
                              dilation=1, negative_slope=0.2, compute_dtype=None):
    """x: (N, Ci, H, W) NCHW. weight: (Co, Ci, kh, kw). bias: (Co,). u0: (Co,)."""
    n, ci, h, w = x.shape
    co, _, kh, kw = weight.shape
    # TODO(synk): groups != 1 not supported (module default groups=1).

    w_sn = spectral_norm_weight(weight, u0)                              # (Co, Ci, kh, kw)
    w_taps = jnp.transpose(w_sn, (2, 3, 0, 1)).reshape(kh * kw, co, ci)  # (T, Co, Ci)

    h_out = (h + 2 * padding - dilation * (kh - 1) - 1) // stride + 1
    w_out = (w + 2 * padding - dilation * (kw - 1) - 1) // stride + 1
    hp, wp = h + 2 * padding, w + 2 * padding

    x_pad = jnp.pad(x, ((0, 0), (0, 0), (padding, padding), (padding, padding)))

    if stride == 1:
        # Fused path: every tap reads a shifted window of ONE flattened buffer.
        # We compute full padded rows (width wp); junk columns are sliced off later.
        out_valid = h_out * wp
        out_len = _round_up(out_valid, 128)            # lane-dense stores / MXU width
        tap_buf, tap_off = [], []
        for i in range(kh):
            for j in range(kw):
                tap_buf.append(0)
                tap_off.append(dilation * (i * wp + j))
        lx = _round_up(max(tap_off) + out_len, 128)
        x_flat = x_pad.reshape(n, ci, hp * wp)
        x_flat = jnp.pad(x_flat, ((0, 0), (0, 0), (0, lx - hp * wp)))
        x_prep = x_flat[:, None, :, :]                 # (N, 1, Ci, Lx)
    else:
        # General strided fallback: one pre-strided buffer per tap (same kernel).
        out_valid = h_out * w_out
        out_len = _round_up(out_valid, 128)
        tap_buf = list(range(kh * kw))
        tap_off = [0] * (kh * kw)
        cols = []
        for i in range(kh):
            for j in range(kw):
                patch = x_pad[:, :,
                              i * dilation: i * dilation + stride * h_out: stride,
                              j * dilation: j * dilation + stride * w_out: stride]
                patch = patch.reshape(n, ci, h_out * w_out)
                cols.append(jnp.pad(patch, ((0, 0), (0, 0), (0, out_len - out_valid))))
        x_prep = jnp.stack(cols, axis=1)               # (N, T, Ci, out_len)

    if compute_dtype is not None:                      # e.g. jnp.bfloat16 on v6e/v7x
        x_prep = x_prep.astype(compute_dtype)
        w_taps = w_taps.astype(compute_dtype)

    b_mat = bias.astype(jnp.float32).reshape(co, 1)

    n_buf = x_prep.shape[1]
    lx_total = x_prep.shape[3]

    kernel = functools.partial(
        _sn_conv_lrelu_kernel,
        tap_buf=tuple(tap_buf), tap_off=tuple(tap_off),
        out_len=out_len, negative_slope=negative_slope)

    y = pl.pallas_call(
        kernel,
        out_shape=jax.ShapeDtypeStruct((n, co, out_len), x.dtype),
        grid_spec=pltpu.PrefetchScalarGridSpec(
            num_scalar_prefetch=0,
            grid=(n,),
            in_specs=[
                pl.BlockSpec((1, n_buf, ci, lx_total), lambda b: (b, 0, 0, 0)),
                pl.BlockSpec((kh * kw, co, ci), lambda b: (0, 0, 0)),
                pl.BlockSpec((co, 1), lambda b: (0, 0)),
            ],
            out_specs=pl.BlockSpec((1, co, out_len), lambda b: (b, 0, 0)),
        ),
        compiler_params=pltpu.CompilerParams(
            dimension_semantics=("parallel",),
            vmem_limit_bytes=32 * 1024 * 1024),
    )(x_prep, w_taps, b_mat)

    if stride == 1:
        # (N, Co, Ho*Wp) -> (N, Co, Ho, Wp) -> drop the wp - w_out junk columns.
        y = y[:, :, :h_out * wp].reshape(n, co, h_out, wp)[:, :, :, :w_out]
    else:
        y = y[:, :, :h_out * w_out].reshape(n, co, h_out, w_out)
    return y


# ----------------------------------------------------------------------------
# Pure-JAX reference for sanity check.
# ----------------------------------------------------------------------------
def _reference(x, weight, bias, u0, *, stride, padding, dilation, negative_slope):
    w_sn = spectral_norm_weight(weight, u0)
    y = jax.lax.conv_general_dilated(
        x, w_sn,
        window_strides=(stride, stride),
        padding=[(padding, padding), (padding, padding)],
        rhs_dilation=(dilation, dilation),
        dimension_numbers=("NCHW", "OIHW", "NCHW"))
    y = y + bias.reshape(1, -1, 1, 1)
    return jnp.where(y >= 0, y, negative_slope * y)


if __name__ == "__main__":
    key = jax.random.PRNGKey(0)
    k_x, k_w, k_b, k_u = jax.random.split(key, 4)

    # Module config: in_channels=4, out_channels=8, kernel_size=3, stride=1, padding=1
    N, Ci, H, W = 2, 4, 16, 16
    Co, KH, KW = 8, 3, 3
    stride, padding, dilation = 1, 1, 1

    x = jax.random.normal(k_x, (N, Ci, H, W), dtype=jnp.float32)
    fan_in = Ci * KH * KW
    weight = jax.random.normal(k_w, (Co, Ci, KH, KW), dtype=jnp.float32) * (2.0 / fan_in) ** 0.5
    bias = jax.random.normal(k_b, (Co,), dtype=jnp.float32) * 0.01
    u0 = jax.random.normal(k_u, (Co,), dtype=jnp.float32)   # spectral-norm power-iter vector

    y = sn_conv2d_with_activation(
        x, weight, bias, u0,
        stride=stride, padding=padding, dilation=dilation, negative_slope=0.2)
    y = jax.block_until_ready(y)

    y_ref = _reference(x, weight, bias, u0,
                       stride=stride, padding=padding, dilation=dilation,
                       negative_slope=0.2)

    assert y.shape == (N, Co, H, W), y.shape
    assert jnp.allclose(y, y_ref, atol=1e-4, rtol=1e-4), float(jnp.max(jnp.abs(y - y_ref)))

    print("KERNEL_OK")
</pallas_src>

<mosaic_0001>
module attributes {stable_mosaic.version = 11 : i64} {
  func.func @_sn_conv_lrelu_kernel(%arg0: i32, %arg1: memref<1x1x4x512xf32, #tpu.memory_space<vmem>>, %arg2: memref<9x8x4xf32, #tpu.memory_space<vmem>>, %arg3: memref<8x1xf32, #tpu.memory_space<vmem>>, %arg4: memref<1x8x384xf32, #tpu.memory_space<vmem>>) attributes {dimension_semantics = [#tpu.dimension_semantics<parallel>], iteration_bounds = array<i64: 2>, scalar_prefetch = 0 : i64, scratch_operands = 0 : i64, tpu.core_type = #tpu.core_type<tc>, window_params = [{transform_indices = @transform_0, window_bounds = array<i64: 1, 1, 4, 512>}, {pipeline_mode = #tpu.pipeline_mode<synchronous>, transform_indices = @transform_1, window_bounds = array<i64: 9, 8, 4>}, {pipeline_mode = #tpu.pipeline_mode<synchronous>, transform_indices = @transform_2, window_bounds = array<i64: 8, 1>}, {transform_indices = @transform_3, window_bounds = array<i64: 1, 8, 384>}]} {
    %c0 = arith.constant 0 : index
    %c0_0 = arith.constant 0 : index
    %0 = vector.load %arg3[%c0, %c0_0] : memref<8x1xf32, #tpu.memory_space<vmem>>, vector<8x1xf32>
    %1 = vector.shape_cast %0 : vector<8x1xf32> to vector<8x1xf32>
    %2 = vector.broadcast %1 : vector<8x1xf32> to vector<8x384xf32>
    %c0_1 = arith.constant 0 : index
    %c0_2 = arith.constant 0 : index
    %c0_3 = arith.constant 0 : index
    %c0_4 = arith.constant 0 : index
    %3 = vector.load %arg1[%c0_1, %c0_2, %c0_3, %c0_4] : memref<1x1x4x512xf32, #tpu.memory_space<vmem>>, vector<1x1x4x512xf32>
    %4 = vector.shape_cast %3 : vector<1x1x4x512xf32> to vector<4x512xf32>
    %5 = vector.extract_strided_slice %4 {offsets = [0, 0], sizes = [4, 384], strides = [1, 1]} : vector<4x512xf32> to vector<4x384xf32>
    %c0_5 = arith.constant 0 : index
    %c0_6 = arith.constant 0 : index
    %c0_7 = arith.constant 0 : index
    %6 = vector.load %arg2[%c0_5, %c0_6, %c0_7] : memref<9x8x4xf32, #tpu.memory_space<vmem>>, vector<1x8x4xf32>
    %7 = vector.shape_cast %6 : vector<1x8x4xf32> to vector<8x4xf32>
    %cst = arith.constant dense<0.000000e+00> : vector<8x384xf32>
    %8 = tpu.matmul %7, %5, %cst {dimension_numbers = #tpu.dot_dimension_numbers<[1], [0], [0], [1], [0, 0, 1, 1], [], []>} : vector<8x4xf32>, vector<4x384xf32>, vector<8x384xf32> -> vector<8x384xf32>
    %9 = arith.addf %2, %8 : vector<8x384xf32>
    %c0_8 = arith.constant 0 : index
    %c0_9 = arith.constant 0 : index
    %c0_10 = arith.constant 0 : index
    %c0_11 = arith.constant 0 : index
    %10 = vector.load %arg1[%c0_8, %c0_9, %c0_10, %c0_11] : memref<1x1x4x512xf32, #tpu.memory_space<vmem>>, vector<1x1x4x512xf32>
    %11 = vector.shape_cast %10 : vector<1x1x4x512xf32> to vector<4x512xf32>
    %12 = vector.extract_strided_slice %11 {offsets = [0, 1], sizes = [4, 384], strides = [1, 1]} : vector<4x512xf32> to vector<4x384xf32>
    %c1 = arith.constant 1 : index
    %c0_12 = arith.constant 0 : index
    %c0_13 = arith.constant 0 : index
    %13 = vector.load %arg2[%c1, %c0_12, %c0_13] : memref<9x8x4xf32, #tpu.memory_space<vmem>>, vector<1x8x4xf32>
    %14 = vector.shape_cast %13 : vector<1x8x4xf32> to vector<8x4xf32>
    %cst_14 = arith.constant dense<0.000000e+00> : vector<8x384xf32>
    %15 = tpu.matmul %14, %12, %cst_14 {dimension_numbers = #tpu.dot_dimension_numbers<[1], [0], [0], [1], [0, 0, 1, 1], [], []>} : vector<8x4xf32>, vector<4x384xf32>, vector<8x384xf32> -> vector<8x384xf32>
    %16 = arith.addf %9, %15 : vector<8x384xf32>
    %c0_15 = arith.constant 0 : index
    %c0_16 = arith.constant 0 : index
    %c0_17 = arith.constant 0 : index
    %c0_18 = arith.constant 0 : index
    %17 = vector.load %arg1[%c0_15, %c0_16, %c0_17, %c0_18] : memref<1x1x4x512xf32, #tpu.memory_space<vmem>>, vector<1x1x4x512xf32>
    %18 = vector.shape_cast %17 : vector<1x1x4x512xf32> to vector<4x512xf32>
    %19 = vector.extract_strided_slice %18 {offsets = [0, 2], sizes = [4, 384], strides = [1, 1]} : vector<4x512xf32> to vector<4x384xf32>
    %c2 = arith.constant 2 : index
    %c0_19 = arith.constant 0 : index
    %c0_20 = arith.constant 0 : index
    %20 = vector.load %arg2[%c2, %c0_19, %c0_20] : memref<9x8x4xf32, #tpu.memory_space<vmem>>, vector<1x8x4xf32>
    %21 = vector.shape_cast %20 : vector<1x8x4xf32> to vector<8x4xf32>
    %cst_21 = arith.constant dense<0.000000e+00> : vector<8x384xf32>
    %22 = tpu.matmul %21, %19, %cst_21 {dimension_numbers = #tpu.dot_dimension_numbers<[1], [0], [0], [1], [0, 0, 1, 1], [], []>} : vector<8x4xf32>, vector<4x384xf32>, vector<8x384xf32> -> vector<8x384xf32>
    %23 = arith.addf %16, %22 : vector<8x384xf32>
    %c0_22 = arith.constant 0 : index
    %c0_23 = arith.constant 0 : index
    %c0_24 = arith.constant 0 : index
    %c0_25 = arith.constant 0 : index
    %24 = vector.load %arg1[%c0_22, %c0_23, %c0_24, %c0_25] : memref<1x1x4x512xf32, #tpu.memory_space<vmem>>, vector<1x1x4x512xf32>
    %25 = vector.shape_cast %24 : vector<1x1x4x512xf32> to vector<4x512xf32>
    %26 = vector.extract_strided_slice %25 {offsets = [0, 18], sizes = [4, 384], strides = [1, 1]} : vector<4x512xf32> to vector<4x384xf32>
    %c3 = arith.constant 3 : index
    %c0_26 = arith.constant 0 : index
    %c0_27 = arith.constant 0 : index
    %27 = vector.load %arg2[%c3, %c0_26, %c0_27] : memref<9x8x4xf32, #tpu.memory_space<vmem>>, vector<1x8x4xf32>
    %28 = vector.shape_cast %27 : vector<1x8x4xf32> to vector<8x4xf32>
    %cst_28 = arith.constant dense<0.000000e+00> : vector<8x384xf32>
    %29 = tpu.matmul %28, %26, %cst_28 {dimension_numbers = #tpu.dot_dimension_numbers<[1], [0], [0], [1], [0, 0, 1, 1], [], []>} : vector<8x4xf32>, vector<4x384xf32>, vector<8x384xf32> -> vector<8x384xf32>
    %30 = arith.addf %23, %29 : vector<8x384xf32>
    %c0_29 = arith.constant 0 : index
    %c0_30 = arith.constant 0 : index
    %c0_31 = arith.constant 0 : index
    %c0_32 = arith.constant 0 : index
    %31 = vector.load %arg1[%c0_29, %c0_30, %c0_31, %c0_32] : memref<1x1x4x512xf32, #tpu.memory_space<vmem>>, vector<1x1x4x512xf32>
    %32 = vector.shape_cast %31 : vector<1x1x4x512xf32> to vector<4x512xf32>
    %33 = vector.extract_strided_slice %32 {offsets = [0, 19], sizes = [4, 384], strides = [1, 1]} : vector<4x512xf32> to vector<4x384xf32>
    %c4 = arith.constant 4 : index
    %c0_33 = arith.constant 0 : index
    %c0_34 = arith.constant 0 : index
    %34 = vector.load %arg2[%c4, %c0_33, %c0_34] : memref<9x8x4xf32, #tpu.memory_space<vmem>>, vector<1x8x4xf32>
    %35 = vector.shape_cast %34 : vector<1x8x4xf32> to vector<8x4xf32>
    %cst_35 = arith.constant dense<0.000000e+00> : vector<8x384xf32>
    %36 = tpu.matmul %35, %33, %cst_35 {dimension_numbers = #tpu.dot_dimension_numbers<[1], [0], [0], [1], [0, 0, 1, 1], [], []>} : vector<8x4xf32>, vector<4x384xf32>, vector<8x384xf32> -> vector<8x384xf32>
    %37 = arith.addf %30, %36 : vector<8x384xf32>
    %c0_36 = arith.constant 0 : index
    %c0_37 = arith.constant 0 : index
    %c0_38 = arith.constant 0 : index
    %c0_39 = arith.constant 0 : index
    %38 = vector.load %arg1[%c0_36, %c0_37, %c0_38, %c0_39] : memref<1x1x4x512xf32, #tpu.memory_space<vmem>>, vector<1x1x4x512xf32>
    %39 = vector.shape_cast %38 : vector<1x1x4x512xf32> to vector<4x512xf32>
    %40 = vector.extract_strided_slice %39 {offsets = [0, 20], sizes = [4, 384], strides = [1, 1]} : vector<4x512xf32> to vector<4x384xf32>
    %c5 = arith.constant 5 : index
    %c0_40 = arith.constant 0 : index
    %c0_41 = arith.constant 0 : index
    %41 = vector.load %arg2[%c5, %c0_40, %c0_41] : memref<9x8x4xf32, #tpu.memory_space<vmem>>, vector<1x8x4xf32>
    %42 = vector.shape_cast %41 : vector<1x8x4xf32> to vector<8x4xf32>
    %cst_42 = arith.constant dense<0.000000e+00> : vector<8x384xf32>
    %43 = tpu.matmul %42, %40, %cst_42 {dimension_numbers = #tpu.dot_dimension_numbers<[1], [0], [0], [1], [0, 0, 1, 1], [], []>} : vector<8x4xf32>, vector<4x384xf32>, vector<8x384xf32> -> vector<8x384xf32>
    %44 = arith.addf %37, %43 : vector<8x384xf32>
    %c0_43 = arith.constant 0 : index
    %c0_44 = arith.constant 0 : index
    %c0_45 = arith.constant 0 : index
    %c0_46 = arith.constant 0 : index
    %45 = vector.load %arg1[%c0_43, %c0_44, %c0_45, %c0_46] : memref<1x1x4x512xf32, #tpu.memory_space<vmem>>, vector<1x1x4x512xf32>
    %46 = vector.shape_cast %45 : vector<1x1x4x512xf32> to vector<4x512xf32>
    %47 = vector.extract_strided_slice %46 {offsets = [0, 36], sizes = [4, 384], strides = [1, 1]} : vector<4x512xf32> to vector<4x384xf32>
    %c6 = arith.constant 6 : index
    %c0_47 = arith.constant 0 : index
    %c0_48 = arith.constant 0 : index
    %48 = vector.load %arg2[%c6, %c0_47, %c0_48] : memref<9x8x4xf32, #tpu.memory_space<vmem>>, vector<1x8x4xf32>
    %49 = vector.shape_cast %48 : vector<1x8x4xf32> to vector<8x4xf32>
    %cst_49 = arith.constant dense<0.000000e+00> : vector<8x384xf32>
    %50 = tpu.matmul %49, %47, %cst_49 {dimension_numbers = #tpu.dot_dimension_numbers<[1], [0], [0], [1], [0, 0, 1, 1], [], []>} : vector<8x4xf32>, vector<4x384xf32>, vector<8x384xf32> -> vector<8x384xf32>
    %51 = arith.addf %44, %50 : vector<8x384xf32>
    %c0_50 = arith.constant 0 : index
    %c0_51 = arith.constant 0 : index
    %c0_52 = arith.constant 0 : index
    %c0_53 = arith.constant 0 : index
    %52 = vector.load %arg1[%c0_50, %c0_51, %c0_52, %c0_53] : memref<1x1x4x512xf32, #tpu.memory_space<vmem>>, vector<1x1x4x512xf32>
    %53 = vector.shape_cast %52 : vector<1x1x4x512xf32> to vector<4x512xf32>
    %54 = vector.extract_strided_slice %53 {offsets = [0, 37], sizes = [4, 384], strides = [1, 1]} : vector<4x512xf32> to vector<4x384xf32>
    %c7 = arith.constant 7 : index
    %c0_54 = arith.constant 0 : index
    %c0_55 = arith.constant 0 : index
    %55 = vector.load %arg2[%c7, %c0_54, %c0_55] : memref<9x8x4xf32, #tpu.memory_space<vmem>>, vector<1x8x4xf32>
    %56 = vector.shape_cast %55 : vector<1x8x4xf32> to vector<8x4xf32>
    %cst_56 = arith.constant dense<0.000000e+00> : vector<8x384xf32>
    %57 = tpu.matmul %56, %54, %cst_56 {dimension_numbers = #tpu.dot_dimension_numbers<[1], [0], [0], [1], [0, 0, 1, 1], [], []>} : vector<8x4xf32>, vector<4x384xf32>, vector<8x384xf32> -> vector<8x384xf32>
    %58 = arith.addf %51, %57 : vector<8x384xf32>
    %c0_57 = arith.constant 0 : index
    %c0_58 = arith.constant 0 : index
    %c0_59 = arith.constant 0 : index
    %c0_60 = arith.constant 0 : index
    %59 = vector.load %arg1[%c0_57, %c0_58, %c0_59, %c0_60] : memref<1x1x4x512xf32, #tpu.memory_space<vmem>>, vector<1x1x4x512xf32>
    %60 = vector.shape_cast %59 : vector<1x1x4x512xf32> to vector<4x512xf32>
    %61 = vector.extract_strided_slice %60 {offsets = [0, 38], sizes = [4, 384], strides = [1, 1]} : vector<4x512xf32> to vector<4x384xf32>
    %c8 = arith.constant 8 : index
    %c0_61 = arith.constant 0 : index
    %c0_62 = arith.constant 0 : index
    %62 = vector.load %arg2[%c8, %c0_61, %c0_62] : memref<9x8x4xf32, #tpu.memory_space<vmem>>, vector<1x8x4xf32>
    %63 = vector.shape_cast %62 : vector<1x8x4xf32> to vector<8x4xf32>
    %cst_63 = arith.constant dense<0.000000e+00> : vector<8x384xf32>
    %64 = tpu.matmul %63, %61, %cst_63 {dimension_numbers = #tpu.dot_dimension_numbers<[1], [0], [0], [1], [0, 0, 1, 1], [], []>} : vector<8x4xf32>, vector<4x384xf32>, vector<8x384xf32> -> vector<8x384xf32>
    %65 = arith.addf %58, %64 : vector<8x384xf32>
    %cst_64 = arith.constant 2.000000e-01 : f32
    %66 = vector.broadcast %cst_64 : f32 to vector<8x384xf32>
    %67 = arith.mulf %66, %65 : vector<8x384xf32>
    %68 = arith.maximumf %65, %67 : vector<8x384xf32>
    %c0_65 = arith.constant 0 : index
    %c0_66 = arith.constant 0 : index
    %c0_67 = arith.constant 0 : index
    %69 = vector.load %arg4[%c0_65, %c0_66, %c0_67] : memref<1x8x384xf32, #tpu.memory_space<vmem>>, vector<1x8x384xf32>
    %70 = vector.shape_cast %69 : vector<1x8x384xf32> to vector<8x384xf32>
    %71 = vector.shape_cast %68 : vector<8x384xf32> to vector<1x8x384xf32>
    tpu.vector_store %arg4[%c0_65, %c0_66, %c0_67], %71 {strides = array<i32>} : memref<1x8x384xf32, #tpu.memory_space<vmem>>, vector<1x8x384xf32>,
    return
  }
  func.func @transform_0(%arg0: i32) -> (i32, i32, i32, i32) {
    %c0_i32 = arith.constant 0 : i32
    %c0_i32_0 = arith.constant 0 : i32
    %c0_i32_1 = arith.constant 0 : i32
    %c0_i32_2 = arith.constant 0 : i32
    return %arg0, %c0_i32, %c0_i32_0, %c0_i32_1 : i32, i32, i32, i32
  }
  func.func @transform_1(%arg0: i32) -> (i32, i32, i32) {
    %c0_i32 = arith.constant 0 : i32
    %c0_i32_0 = arith.constant 0 : i32
    %c0_i32_1 = arith.constant 0 : i32
    %c0_i32_2 = arith.constant 0 : i32
    return %c0_i32, %c0_i32_0, %c0_i32_1 : i32, i32, i32
  }
  func.func @transform_2(%arg0: i32) -> (i32, i32) {
    %c0_i32 = arith.constant 0 : i32
    %c0_i32_0 = arith.constant 0 : i32
    %c0_i32_1 = arith.constant 0 : i32
    return %c0_i32, %c0_i32_0 : i32, i32
  }
  func.func @transform_3(%arg0: i32) -> (i32, i32, i32) {
    %c0_i32 = arith.constant 0 : i32
    %c0_i32_0 = arith.constant 0 : i32
    %c0_i32_1 = arith.constant 0 : i32
    return %arg0, %c0_i32, %c0_i32_0 : i32, i32, i32
  }
}

</mosaic_0001>

<bundles_post_ra>
// kernel: tpu_custom_call.1
= control target key start
LH: loop header
LB: loop body
LE: loop exit
PB: predicated region body
PF: predicated region fallthrough
CT: control target
= control target key end

     0   :  { %8 = vsyncpa [#allocation3], 0  ;;  %s1528_s0 = inlined_call_operand.vmem [shape: f32[2,1,4,512], index: 0, kind: input, shape index: {}]   ;;  %s1529_s1 = inlined_call_operand.vmem [shape: f32[9,8,4], index: 1, kind: input, shape index: {}]   ;;  %s1530_s2 = inlined_call_operand.vmem [shape: f32[8,1], index: 2, kind: input, shape index: {}]   ;;  %s1531_s3 = inlined_call_operand.hbm [shape: f32[2,8,384], index: 3, kind: output, shape index: {}]  }
   0x1   :  { %10 = vsyncpa [#allocation3 + $0x1], 0  ;;  %s1306_s12 = smov 0   ;;  %s1308_s13 = smov 0  }
   0x2   :  { %s1310_s14 = smov 0   ;;  %s1312_s15 = smov 0  }
   0x3 LB: > { %s1327_s16 = sadd.s32 4294967295, %s1275_s15   ;;  %s1089_s17 = sadd.s32 4294967294, %s1275_s15   ;;  %s1275_s15 = sphi %s1312_s15, %s1537_s15   ;;  %s1271_s14 = sphi %s1310_s14, %s1536_s14   ;;  %s1267_s13 = sphi %s1308_s13, %s1535_s13   ;;  %s1263_s12 = sphi %s1306_s12, %s1534_s12  }
   0x4   : > { %s1331_s18 = sadd.s32 1, %s1275_s15   ;;  %s91_s19 = sadd.s32 1, %s1271_s14 }
   0x5   : > { %s88_s20 = ssub.s32 %s1275_s15, %s1331_s18  ;;  %p101_p0 = scmp.ne.s32.totalorder %s1271_s14, %s1267_s13 }
   0x6   : > { %p89_p1 = scmp.eq.s32.totalorder %s88_s20, 0  ;;  %p102_p2 = scmp.eq.s32.totalorder %s1327_s16, 1 }
   0x7   : > { %p107_p3 = scmp.ne.s32.totalorder %s1267_s13, %s1263_s12  ;;  %p108_p4 = scmp.eq.s32.totalorder %s1089_s17, 1 }
   0x8   : > { %s1342_s21 = scalar_select %p89_p1, %s1271_s14, %s91_s19  }
   0x9   : > { %p1344_p5 = por %p102_p2, %p101_p0  ;;  %p1348_p6 = por %p108_p4, %p107_p3 }
   0xa   : > { %p1092_p7 = scmp.ge.s32.totalorder %s1275_s15, 1  ;;  %p140_p8 = scmp.lt.s32.totalorder %s1275_s15, 3 }
   0xc   : > { %p141_p9 = pnand %p1092_p7, %p140_p8 }
   0xd   : > { %p164_p10 = scmp.lt.s32.totalorder (!%p141_p9), %s1327_s16, 1  ;;  %s1277_s29 = smov (!%p141_p9), 127  }
   0xe   : > { %144 = sbr.rel (%p141_p9) target bundleno = 381 (0x17d), region = 32  ;;  %s1278_s30 = smov (!%p141_p9), 126  }
   0xf   : > { %s1279_s4 = smov (!%p141_p9), 110   ;;  %s1280_s5 = smov (!%p141_p9), 109  }
  0x10   : > { %s1281_s6 = smov (!%p141_p9), 108   ;;  %s1282_s7 = smov (!%p141_p9), 92  }
  0x11   : > { %s1283_s8 = smov (!%p141_p9), 91   ;;  %s1284_s9 = smov (!%p141_p9), 90  }
  0x12   : > { %s161_s17 = sand.u32 (!%p141_p9), 1, %s1267_s13   ;;  %s1162_s20 = smul.u32 (!%p141_p9), 24, %s1327_s16 }
  0x13   : > { %s165_s24 = scalar_select %p164_p10, %s1327_s16, 1  ;;  %vm190_vm0 = vcmask 1043456   ;;  %vm277_vm1 = vcmask 1039360   ;;  %v177_v40 = vld [vmem:[%s1529_s1] sm:$0xff]  ;;  %vm186_vm2 = vcmask 31744   ;;  %v1101_v42 = vld [vmem:[%s1529_s1 + $0x8] sm:$0xff] }
  0x14   : > { %vm370_vm3 = vcmask 1031168   ;;  %vm463_vm4 = vcmask 900096   ;;  %v1108_v53 = vld [vmem:[%s1529_s1 + $0x10] sm:$0xff]  ;;  %v1115_v59 = vld [vmem:[%s1529_s1 + $0x18] sm:$0xff]  ;;  %vm556_vm5 = vcmask 891904   ;;  %vm649_vm6 = vcmask 883712   ;;  %s1025_s26 = scalar_lea.hbm %s1531_s3, %s1162_s20 }
  0x15   : > { %s1160_s25 = sshll.u32 %s165_s24, 4  ;;  %vm835_vm7 = vcmask 744448   ;;  %vm742_vm8 = vcmask 752640   ;;  %vm928_vm9 = vcmask 736256   ;;  %s1161_s19 = smul.u32 24, %s161_s17 }
  0x16   : > { %s168_s28 = scalar_lea.vmem %s1528_s0, %s1160_s25 }
  0x17   : > { %v1359_v0 = vld [vmem:[%s168_s28] sm:$0xff]  ;;  %v1361_v1 = vld [vmem:[%s168_s28 + $0x8] sm:$0xff]  ;;  %s163_s16 = scalar_lea.vmem [#allocation2], %s1161_s19  ;;  %s1029_s28 = sshll.u32 %s1025_s26, 4  ;;  %s1030_s28 = int_to_ptr.hbm [resolvable:$true] %s1029_s28 }
  0x18   : > { %180 = vst [vmem:[#allocation1] ss:$2 sm:$0xff] %v1359_v0  ;;  %s1027_s27 = sshll.u32 %s163_s16, 4  ;;  %s1028_s27 = int_to_ptr.vmem [resolvable:$true] %s1027_s27 }
  0x19   : > { %182 = vst [vmem:[#allocation1 + $0x10] ss:$2 sm:$0xff] %v1361_v1 }
  0x1f   : > { %v1365_v2 = vld.sshfl [vmem:[#allocation1] sm:$0xff pattern:$0x75316420]  ;;  %v1367_v3 = vld.sshfl [vmem:[#allocation1 + $0x8] sm:$0xff pattern:$0x75316420] }
  0x20   : > { %262 = vst [vmem:[#allocation1] ss:$2 sm:$0xff] %v1359_v0  ;;  %v1370_v4 = vld.sshfl [vmem:[#allocation1 + $0x10] sm:$0xff pattern:$0x75316420]  ;;  %1095 = vmatpush.msk.msra.mxu0 %vm190_vm0, %v1365_v2  ;;  %1097 = vmatpush.msk.msra.mxu1 %vm190_vm0, %v1367_v3 }
  0x21   : > { %264 = vst [vmem:[#allocation1 + $0x10] ss:$2 sm:$0xff] %v1361_v1  ;;  %1099 = vmatpush.msk.msra.mxu2 %vm190_vm0, %v1370_v4  ;;  %1096 = vmatmul.msk.f32.vlgmr.msra.gmra.mxu0 %vm186_vm2, %v177_v40 }
  0x22   : > { %1100 = vmatmul.msk.f32.vlgmr.msra.gmra.mxu2 %vm186_vm2, %v177_v40  ;;  %1098 = vmatmul.msk.f32.vlgmr.msra.gmra.mxu1 %vm186_vm2, %v177_v40 }
  0x27   : > { %v265_v5 = vld.sshfl [vmem:[#allocation1] sm:$0xff pattern:$0x75316420]  ;;  %v266_v6 = vld.sshfl [vmem:[#allocation1 + $0x8] sm:$0xff pattern:$0x75316420] }
  0x28   : > { %269 = vrot.lane.b32.xlu0 %v265_v5, %s1277_s29  ;;  %355 = vst [vmem:[#allocation1] ss:$2 sm:$0xff] %v1359_v0  ;;  %v267_v7 = vld.sshfl [vmem:[#allocation1 + $0x10] sm:$0xff pattern:$0x75316420]  ;;  %v1122_v5 = vld [vmem:[%s1529_s1 + $0x20] sm:$0xff] }
  0x29   : > { %v268_v8 = vld.sshfl [vmem:[#allocation1 + $0x18] sm:$0xff pattern:$0x75316420]  ;;  %273 = vrot.lane.b32.xlu2 %v267_v7, %s1277_s29 }
  0x2a   : > { %357 = vst [vmem:[#allocation1 + $0x10] ss:$2 sm:$0xff] %v1361_v1 }
  0x2f   : > { %v358_v9 = vld.sshfl [vmem:[#allocation1] sm:$0xff pattern:$0x75316420]  ;;  %v359_v10 = vld.sshfl [vmem:[#allocation1 + $0x8] sm:$0xff pattern:$0x75316420] }
  0x30   : > { %271 = vrot.lane.b32.xlu0 %v266_v6, %s1277_s29  ;;  %362 = vrot.lane.b32.xlu1 %v358_v9, %s1278_s30  ;;  %448 = vst [vmem:[#allocation1] ss:$2 sm:$0xff] %v1359_v0 }
  0x31   : > { %v360_v11 = vld.sshfl [vmem:[#allocation1 + $0x10] sm:$0xff pattern:$0x75316420]  ;;  %v361_v12 = vld.sshfl [vmem:[#allocation1 + $0x18] sm:$0xff pattern:$0x75316420]  ;;  %275 = vrot.lane.b32.xlu2 %v268_v8, %s1277_s29 }
  0x32   : > { %450 = vst [vmem:[#allocation1 + $0x10] ss:$2 sm:$0xff] %v1361_v1  ;;  %s1014_s29 = scalar_lea.sflag [#allocation3], %s161_s17 }
  0x37   : > { %v452_v13 = vld.sshfl [vmem:[#allocation1 + $0x8] sm:$0xff pattern:$0x75316420]  ;;  %v451_v14 = vld.sshfl [vmem:[#allocation1] sm:$0xff pattern:$0x75316420] }
  0x38   : > { %366 = vrot.lane.b32.xlu0 %v360_v11, %s1278_s30  ;;  %364 = vrot.lane.b32.xlu1 %v359_v10, %s1278_s30  ;;  %541 = vst [vmem:[#allocation1] ss:$2 sm:$0xff] %v1359_v0  ;;  %v1285_v10 = vmov 0   ;;  %v169_v11 = vld [vmem:[%s1530_s2] sm:$0xff] }
  0x39   : > { %v453_v15 = vld.sshfl [vmem:[#allocation1 + $0x10] sm:$0xff pattern:$0x75316420]  ;;  %v454_v16 = vld.sshfl [vmem:[#allocation1 + $0x18] sm:$0xff pattern:$0x75316420]  ;;  %1211 = vset.pattern.permute.xlu2 %v1285_v10  ;;  %1212 = vset.pattern.permute.xlu0 %v1285_v10 }
  0x3a   : > { %543 = vst [vmem:[#allocation1 + $0x10] ss:$2 sm:$0xff] %v1361_v1  ;;  %459 = vrot.lane.b32.xlu2 %v453_v15, %s1279_s4  ;;  %v1129_v15 = vld [vmem:[%s1529_s1 + $0x28] sm:$0xff] }
  0x3f   : > { %v544_v17 = vld.sshfl [vmem:[#allocation1] sm:$0xff pattern:$0x75316420]  ;;  %v545_v18 = vld.sshfl [vmem:[#allocation1 + $0x8] sm:$0xff pattern:$0x75316420] }
  0x40   : > { %368 = vrot.lane.b32.xlu0 %v361_v12, %s1278_s30  ;;  %457 = vrot.lane.b32.xlu1 %v452_v13, %s1279_s4  ;;  %634 = vst [vmem:[#allocation1] ss:$2 sm:$0xff] %v1359_v0  ;;  %s1227_s30 = sshra.s32 %s1030_s28, 4  ;;  %s1228_s30 = int_to_ptr.hbm [resolvable:$true] %s1227_s30 }
  0x41   : > { %v546_v19 = vld.sshfl [vmem:[#allocation1 + $0x10] sm:$0xff pattern:$0x75316420]  ;;  %v547_v20 = vld.sshfl [vmem:[#allocation1 + $0x18] sm:$0xff pattern:$0x75316420]  ;;  %p1234_p0 = scmp.lt.s32.totalorder %s1228_s30, %s1531_s3 }
  0x42   : > { %636 = vst [vmem:[#allocation1 + $0x10] ss:$2 sm:$0xff] %v1361_v1  ;;  %461 = vrot.lane.b32.xlu2 %v454_v16, %s1279_s4 }
  0x47   : > { %v637_v21 = vld.sshfl [vmem:[#allocation1] sm:$0xff pattern:$0x75316420]  ;;  %v638_v22 = vld.sshfl [vmem:[#allocation1 + $0x8] sm:$0xff pattern:$0x75316420] }
  0x48   : > { %552 = vrot.lane.b32.xlu0 %v546_v19, %s1280_s5  ;;  %455 = vrot.lane.b32.xlu1 %v451_v14, %s1279_s4  ;;  %727 = vst [vmem:[#allocation1] ss:$2 sm:$0xff] %v1359_v0  ;;  %s1229_s4 = scalar_lea.hbm %s1228_s30, 24 }
  0x49   : > { %v639_v23 = vld.sshfl [vmem:[#allocation1 + $0x10] sm:$0xff pattern:$0x75316420]  ;;  %v640_v24 = vld.sshfl [vmem:[#allocation1 + $0x18] sm:$0xff pattern:$0x75316420]  ;;  %p1230_p11 = scmp.ne.s32.totalorder %s1228_s30, %s1229_s4 }
  0x4a   : > { %729 = vst [vmem:[#allocation1 + $0x10] ss:$2 sm:$0xff] %v1361_v1  ;;  %548 = vrot.lane.b32.xlu2 %v544_v17, %s1280_s5 }
  0x4b   : > { %p1231_p12 = pnand %p1230_p11, %p1344_p5 }
  0x4d   : > { %p1232_p13 = pneg %p1231_p12 }
  0x4f   : > { %v731_v25 = vld.sshfl [vmem:[#allocation1 + $0x8] sm:$0xff pattern:$0x75316420]  ;;  %v730_v26 = vld.sshfl [vmem:[#allocation1] sm:$0xff pattern:$0x75316420] }
  0x50   : > { %554 = vrot.lane.b32.xlu1 %v547_v20, %s1280_s5  ;;  %550 = vrot.lane.b32.xlu0 %v545_v18, %s1280_s5  ;;  %820 = vst [vmem:[#allocation1] ss:$2 sm:$0xff] %v1359_v0 }
  0x51   : > { %v732_v27 = vld.sshfl [vmem:[#allocation1 + $0x10] sm:$0xff pattern:$0x75316420]  ;;  %v733_v28 = vld.sshfl [vmem:[#allocation1 + $0x18] sm:$0xff pattern:$0x75316420] }
  0x52   : > { %643 = vrot.lane.b32.xlu2 %v638_v22, %s1281_s6  ;;  %822 = vst [vmem:[#allocation1 + $0x10] ss:$2 sm:$0xff] %v1361_v1  ;;  %v1143_v22 = vld [vmem:[%s1529_s1 + $0x38] sm:$0xff] }
  0x57   : > { %v824_v29 = vld.sshfl [vmem:[#allocation1 + $0x8] sm:$0xff pattern:$0x75316420]  ;;  %v823_v30 = vld.sshfl [vmem:[#allocation1] sm:$0xff pattern:$0x75316420] }
  0x58   : > { %647 = vrot.lane.b32.xlu0 %v640_v24, %s1281_s6  ;;  %641 = vrot.lane.b32.xlu1 %v637_v21, %s1281_s6  ;;  %913 = vst [vmem:[#allocation1] ss:$2 sm:$0xff] %v1359_v0  ;;  %v1136_v21 = vld [vmem:[%s1529_s1 + $0x30] sm:$0xff] }
  0x59   : > { %v825_v31 = vld.sshfl [vmem:[#allocation1 + $0x10] sm:$0xff pattern:$0x75316420]  ;;  %v826_v32 = vld.sshfl [vmem:[#allocation1 + $0x18] sm:$0xff pattern:$0x75316420] }
  0x5a   : > { %645 = vrot.lane.b32.xlu2 %v639_v23, %s1281_s6  ;;  %915 = vst [vmem:[#allocation1 + $0x10] ss:$2 sm:$0xff] %v1361_v1 }
  0x5f   : > { %v916_v35 = vld.sshfl [vmem:[#allocation1] sm:$0xff pattern:$0x75316420]  ;;  %v917_v36 = vld.sshfl [vmem:[#allocation1 + $0x8] sm:$0xff pattern:$0x75316420] }
  0x60   : > { %736 = vrot.lane.b32.xlu1 %v731_v25, %s1282_s7  ;;  %734 = vrot.lane.b32.xlu0 %v730_v26, %s1282_s7 }
  0x61   : > { %v919_v33 = vld.sshfl [vmem:[#allocation1 + $0x18] sm:$0xff pattern:$0x75316420]  ;;  %v918_v34 = vld.sshfl [vmem:[#allocation1 + $0x10] sm:$0xff pattern:$0x75316420] }
  0x62   : > { %829 = vrot.lane.b32.xlu2 %v824_v29, %s1283_s8 }
  0x68   : > { %738 = vrot.lane.b32.xlu1 %v732_v27, %s1282_s7  ;;  %831 = vrot.lane.b32.xlu0 %v825_v31, %s1283_s8 }
  0x6a   : > { %827 = vrot.lane.b32.xlu2 %v823_v30, %s1283_s8 }
  0x70   : > { %740 = vrot.lane.b32.xlu1 %v733_v28, %s1282_s7  ;;  %833 = vrot.lane.b32.xlu0 %v826_v32, %s1283_s8  ;;  %s1233_s7 = scalar_lea.hbm %s1531_s3, 48 }
  0x71   : > { %p1235_p1 = scmp.lt.s32.totalorder %s1233_s7, %s1229_s4 }
  0x72   : > { %926 = vrot.lane.b32.xlu2 %v919_v33, %s1284_s9 }
  0x73   : > { %p1236_p2 = por %p1235_p1, %p1234_p0 }
  0x75   : > { %p1237_p3 = pnand %p1236_p2, %p1232_p13 }
  0x78   : > { %924 = vrot.lane.b32.xlu1 %v918_v34, %s1284_s9  ;;  %920 = vrot.lane.b32.xlu0 %v916_v35, %s1284_s9  ;;  %v1150_v34 = vld [vmem:[%s1529_s1 + $0x40] sm:$0xff] }
  0x7a   : > { %172 = vperm.xlu2 %1211, %v169_v11  }
  0x80   : > { %922 = vrot.lane.b32.xlu1 %v917_v36, %s1284_s9 }
  0x83   : > { %v274_v37 = vpop.permute.xlu2 %273 }
  0x8b   : > { %v276_v38 = vpop.permute.xlu2 %275 }
  0x8c   : > { %v280_v39 = vsel %vm277_vm1, %v274_v37, %v276_v38 }
  0x8d   : > { %1106 = vmatpush.msk.msrb.mxu1 %vm190_vm0, %v280_v39 }
  0x8e   : > { %1107 = vmatmul.msk.f32.vlgmr.msrb.gmra.mxu1 %vm186_vm2, %v1101_v42 }
  0x94   : > { %v460_v41 = vpop.permute.xlu2 %459 }
  0x9a   : > { %v270_v43 = vpop.permute.xlu0 %269 }
  0x9c   : > { %v462_v44 = vpop.permute.xlu2 %461 }
  0x9d   : > { %v466_v52 = vsel %vm463_vm4, %v460_v41, %v462_v44 }
  0x9f   : > { %v234_v40 = vpop.f32.mrf.mxu1 }
  0xa2   : > { %v272_v45 = vpop.permute.xlu0 %271  ;;  %v363_v46 = vpop.permute.xlu1 %362 }
  0xa3   : > { %v278_v47 = vsel %vm277_vm1, %v270_v43, %v272_v45  ;;  %v279_v48 = vsel %vm277_vm1, %v272_v45, %v274_v37 }
  0xa4   : > { %1102 = vmatpush.msk.msra.mxu3 %vm190_vm0, %v278_v47  ;;  %1104 = vmatpush.msk.msrb.mxu0 %vm190_vm0, %v279_v48  ;;  %v549_v49 = vpop.permute.xlu2 %548 }
  0xa5   : > { %1103 = vmatmul.msk.f32.vlgmr.msra.gmra.mxu3 %vm186_vm2, %v1101_v42  ;;  %1105 = vmatmul.msk.f32.vlgmr.msrb.gmra.mxu0 %vm186_vm2, %v1101_v42  ;;  %v254_v42 = vpop.f32.mrf.mxu2 }
  0xaa   : > { %v367_v50 = vpop.permute.xlu0 %366  ;;  %v365_v51 = vpop.permute.xlu1 %364 }
  0xab   : > { %v371_v54 = vsel %vm370_vm3, %v363_v46, %v365_v51  ;;  %v372_v55 = vsel %vm370_vm3, %v365_v51, %v367_v50 }
  0xac   : > { %1109 = vmatpush.msk.msrb.mxu2 %vm190_vm0, %v371_v54  ;;  %1111 = vmatpush.msk.msrb.mxu3 %vm190_vm0, %v372_v55  ;;  %v644_v56 = vpop.permute.xlu2 %643 }
  0xad   : > { %1110 = vmatmul.msk.f32.vlgmr.msrb.gmra.mxu2 %vm186_vm2, %v1108_v53  ;;  %1112 = vmatmul.msk.f32.vlgmr.msrb.gmra.mxu3 %vm186_vm2, %v1108_v53 }
  0xae   : > { %1120 = vmatpush.msk.msra.mxu3 %vm190_vm0, %v466_v52 }
  0xb2   : > { %v369_v57 = vpop.permute.xlu0 %368  ;;  %v458_v58 = vpop.permute.xlu1 %457 }
  0xb3   : > { %v373_v60 = vsel %vm370_vm3, %v367_v50, %v369_v57  ;;  %v465_v61 = vsel %vm463_vm4, %v458_v58, %v460_v41  ;;  %v214_v41 = vpop.f32.mrf.mxu0 }
  0xb4   : > { %1113 = vmatpush.msk.msra.mxu0 %vm190_vm0, %v373_v60  ;;  %1118 = vmatpush.msk.msra.mxu2 %vm190_vm0, %v465_v61  ;;  %v646_v62 = vpop.permute.xlu2 %645 }
  0xb5   : > { %1119 = vmatmul.msk.f32.vlgmr.msra.gmra.mxu2 %vm186_vm2, %v1115_v59  ;;  %1114 = vmatmul.msk.f32.vlgmr.msra.gmra.mxu0 %vm186_vm2, %v1108_v53  ;;  %v651_v9 = vsel %vm649_vm6, %v644_v56, %v646_v62 }
  0xb6   : > { %1121 = vmatmul.msk.f32.vlgmr.msra.gmra.mxu3 %vm186_vm2, %v1115_v59 }
  0xba   : > { %v553_v63 = vpop.permute.xlu0 %552  ;;  %v456_v0 = vpop.permute.xlu1 %455 }
  0xbb   : > { %v464_v1 = vsel %vm463_vm4, %v456_v0, %v458_v58 }
  0xbc   : > { %1116 = vmatpush.msk.msra.mxu1 %vm190_vm0, %v464_v1  ;;  %v830_v2 = vpop.permute.xlu2 %829 }
  0xbd   : > { %1117 = vmatmul.msk.f32.vlgmr.msra.gmra.mxu1 %vm186_vm2, %v1115_v59 }
  0xc2   : > { %v555_v3 = vpop.permute.xlu1 %554  ;;  %v551_v4 = vpop.permute.xlu0 %550 }
  0xc3   : > { %v559_v6 = vsel %vm556_vm5, %v553_v63, %v555_v3  ;;  %v557_v7 = vsel %vm556_vm5, %v549_v49, %v551_v4  ;;  %v558_v8 = vsel %vm556_vm5, %v551_v4, %v553_v63 }
  0xc4   : > { %1125 = vmatpush.msk.msrb.mxu1 %vm190_vm0, %v558_v8  ;;  %1127 = vmatpush.msk.msrb.mxu2 %vm190_vm0, %v559_v6  ;;  %v828_v12 = vpop.permute.xlu2 %827 }
  0xc5   : > { %1123 = vmatpush.msk.msrb.mxu0 %vm190_vm0, %v557_v7  ;;  %1126 = vmatmul.msk.f32.vlgmr.msrb.gmra.mxu1 %vm186_vm2, %v1122_v5  ;;  %v836_v18 = vsel %vm835_vm7, %v828_v12, %v830_v2 }
  0xc6   : > { %1128 = vmatmul.msk.f32.vlgmr.msrb.gmra.mxu2 %vm186_vm2, %v1122_v5  ;;  %1124 = vmatmul.msk.f32.vlgmr.msrb.gmra.mxu0 %vm186_vm2, %v1122_v5 }
  0xc7   : > { %1132 = vmatpush.msk.msra.mxu0 %vm190_vm0, %v651_v9 }
  0xca   : > { %v648_v13 = vpop.permute.xlu0 %647  ;;  %v642_v14 = vpop.permute.xlu1 %641 }
  0xcb   : > { %v652_v16 = vsel %vm649_vm6, %v646_v62, %v648_v13  ;;  %v650_v17 = vsel %vm649_vm6, %v642_v14, %v644_v56 }
  0xcc   : > { %1130 = vmatpush.msk.msrb.mxu3 %vm190_vm0, %v650_v17  ;;  %1134 = vmatpush.msk.msra.mxu1 %vm190_vm0, %v652_v16  ;;  %v927_v32 = vpop.permute.xlu2 %926 }
  0xcd   : > { %1131 = vmatmul.msk.f32.vlgmr.msrb.gmra.mxu3 %vm186_vm2, %v1129_v15  ;;  %1135 = vmatmul.msk.f32.vlgmr.msra.gmra.mxu1 %vm186_vm2, %v1129_v15 }
  0xce   : > { %1133 = vmatmul.msk.f32.vlgmr.msra.gmra.mxu0 %vm186_vm2, %v1129_v15  ;;  %1144 = vmatpush.msk.msrb.mxu1 %vm190_vm0, %v836_v18 }
  0xd2   : > { %v737_v19 = vpop.permute.xlu1 %736  ;;  %v735_v20 = vpop.permute.xlu0 %734 }
  0xd3   : > { %v743_v23 = vsel %vm742_vm8, %v735_v20, %v737_v19 }
  0xd4   : > { %1137 = vmatpush.msk.msra.mxu2 %vm190_vm0, %v743_v23  ;;  %v173_v52 = vpop.permute.xlu2 %172 }
  0xd5   : > { %1138 = vmatmul.msk.f32.vlgmr.msra.gmra.mxu2 %vm186_vm2, %v1136_v21  ;;  %1145 = vmatmul.msk.f32.vlgmr.msrb.gmra.mxu1 %vm186_vm2, %v1143_v22  ;;  %v258_v53 = vadd.f32 %v234_v40, %v173_v52  ;;  %v259_v54 = vadd.f32 %v254_v42, %v173_v52  ;;  %v257_v58 = vadd.f32 %v214_v41, %v173_v52 }
  0xda   : > { %v739_v24 = vpop.permute.xlu1 %738  ;;  %v832_v25 = vpop.permute.xlu0 %831 }
  0xdb   : > { %v744_v26 = vsel %vm742_vm8, %v737_v19, %v739_v24  ;;  %v837_v27 = vsel %vm835_vm7, %v830_v2, %v832_v25 }
  0xdc   : > { %1139 = vmatpush.msk.msra.mxu3 %vm190_vm0, %v744_v26  ;;  %1146 = vmatpush.msk.msrb.mxu2 %vm190_vm0, %v837_v27 }
  0xdd   : > { %1140 = vmatmul.msk.f32.vlgmr.msra.gmra.mxu3 %vm186_vm2, %v1136_v21  ;;  %1147 = vmatmul.msk.f32.vlgmr.msrb.gmra.mxu2 %vm186_vm2, %v1143_v22 }
  0xe2   : > { %v741_v28 = vpop.permute.xlu1 %740  ;;  %v834_v29 = vpop.permute.xlu0 %833 }
  0xe3   : > { %v745_v30 = vsel %vm742_vm8, %v739_v24, %v741_v28  ;;  %v838_v31 = vsel %vm835_vm7, %v832_v25, %v834_v29 }
  0xe4   : > { %1141 = vmatpush.msk.msrb.mxu0 %vm190_vm0, %v745_v30  ;;  %1148 = vmatpush.msk.msrb.mxu3 %vm190_vm0, %v838_v31 }
  0xe5   : > { %1142 = vmatmul.msk.f32.vlgmr.msrb.gmra.mxu0 %vm186_vm2, %v1136_v21  ;;  %1149 = vmatmul.msk.f32.vlgmr.msrb.gmra.mxu3 %vm186_vm2, %v1143_v22 }
  0xea   : > { %v925_v33 = vpop.permute.xlu1 %924  ;;  %v921_v36 = vpop.permute.xlu0 %920 }
  0xeb   : > { %v931_v35 = vsel %vm928_vm9, %v925_v33, %v927_v32 }
  0xec   : > { %1155 = vmatpush.msk.msra.mxu2 %vm190_vm0, %v931_v35 }
  0xed   : > { %1156 = vmatmul.msk.f32.vlgmr.msra.gmra.mxu2 %vm186_vm2, %v1150_v34 }
  0xf2   : > { %v923_v37 = vpop.permute.xlu1 %922 }
  0xf3   : > { %v930_v38 = vsel %vm928_vm9, %v923_v37, %v925_v33  ;;  %v929_v39 = vsel %vm928_vm9, %v921_v36, %v923_v37 }
  0xf4   : > { %1151 = vmatpush.msk.msra.mxu0 %vm190_vm0, %v929_v39  ;;  %1153 = vmatpush.msk.msra.mxu1 %vm190_vm0, %v930_v38 }
  0xf5   : > { %1152 = vmatmul.msk.f32.vlgmr.msra.gmra.mxu0 %vm186_vm2, %v1150_v34  ;;  %1154 = vmatmul.msk.f32.vlgmr.msra.gmra.mxu1 %vm186_vm2, %v1150_v34 }
 0x10b   : > { %v347_v44 = vpop.f32.mrf.mxu1 }
 0x10c   : > { %v352_v61 = vadd.f32 %v347_v44, %v259_v54 }
 0x122   : > { %v327_v45 = vpop.f32.mrf.mxu0 }
 0x123   : > { %v351_v60 = vadd.f32 %v327_v45, %v258_v53 }
 0x128   : > { %v307_v43 = vpop.f32.mrf.mxu3 }
 0x129   : > { %v350_v62 = vadd.f32 %v307_v43, %v257_v58 }
 0x130   : > { %v400_v46 = vpop.f32.mrf.mxu2  ;;  %v420_v47 = vpop.f32.mrf.mxu3 }
 0x131   : > { %v444_v63 = vadd.f32 %v420_v47, %v351_v60  ;;  %v443_v2 = vadd.f32 %v400_v46, %v350_v62 }
 0x132   : > { %v440_v49 = vpop.f32.mrf.mxu0 }
 0x133   : > { %v445_v0 = vadd.f32 %v440_v49, %v352_v61 }
 0x138   : > { %v513_v50 = vpop.f32.mrf.mxu2 }
 0x139   : > { %v533_v51 = vpop.f32.mrf.mxu3  ;;  %v537_v6 = vadd.f32 %v513_v50, %v444_v63 }
 0x13a   : > { %v493_v48 = vpop.f32.mrf.mxu1  ;;  %v538_v7 = vadd.f32 %v533_v51, %v445_v0 }
 0x13b   : > { %v536_v8 = vadd.f32 %v493_v48, %v443_v2 }
 0x142   : > { %v606_v55 = vpop.f32.mrf.mxu1 }
 0x143   : > { %v586_v56 = vpop.f32.mrf.mxu0  ;;  %v630_v9 = vadd.f32 %v606_v55, %v537_v6 }
 0x144   : > { %v629_v12 = vadd.f32 %v586_v56, %v536_v8 }
 0x149   : > { %v626_v57 = vpop.f32.mrf.mxu2 }
 0x14a   : > { %v719_v3 = vpop.f32.mrf.mxu1  ;;  %v631_v10 = vadd.f32 %v626_v57, %v538_v7 }
 0x14b   : > { %v699_v4 = vpop.f32.mrf.mxu0 }
 0x14c   : > { %v724_v15 = vadd.f32 %v719_v3, %v631_v10  ;;  %v723_v17 = vadd.f32 %v699_v4, %v630_v9 }
 0x150   : > { %v679_v59 = vpop.f32.mrf.mxu3 }
 0x151   : > { %v722_v16 = vadd.f32 %v679_v59, %v629_v12 }
 0x152   : > { %v865_v13 = vpop.f32.mrf.mxu1 }
 0x158   : > { %v772_v1 = vpop.f32.mrf.mxu2 }
 0x159   : > { %v815_v19 = vadd.f32 %v772_v1, %v722_v16 }
 0x15b   : > { %v908_v24 = vadd.f32 %v865_v13, %v815_v19 }
 0x160   : > { %v792_v5 = vpop.f32.mrf.mxu3  ;;  %v885_v11 = vpop.f32.mrf.mxu2 }
 0x161   : > { %v816_v20 = vadd.f32 %v792_v5, %v723_v17 }
 0x162   : > { %v812_v14 = vpop.f32.mrf.mxu0 }
 0x163   : > { %v817_v21 = vadd.f32 %v812_v14, %v724_v15  ;;  %v909_v25 = vadd.f32 %v885_v11, %v816_v20 }
 0x168   : > { %v905_v18 = vpop.f32.mrf.mxu3 }
 0x169   : > { %v910_v22 = vadd.f32 %v905_v18, %v817_v21 }
 0x170   : > { %v998_v23 = vpop.f32.mrf.mxu2 }
 0x171   : > { %v1003_v26 = vadd.f32 %v998_v23, %v910_v22 }
 0x172   : > { %v958_v27 = vpop.f32.mrf.mxu0  ;;  %v978_v28 = vpop.f32.mrf.mxu1 }
 0x173   : > { %v1006_v29 = vmul.f32 0.2, %v1003_v26  ;;  %v1001_v30 = vadd.f32 %v958_v27, %v908_v24  ;;  %v1002_v31 = vadd.f32 %v978_v28, %v909_v25 }
 0x175   : > { %v1009_v32 = vmax.f32 %v1003_v26, %v1006_v29  ;;  %v1004_v33 = vmul.f32 0.2, %v1001_v30  ;;  %v1005_v34 = vmul.f32 0.2, %v1002_v31 }
 0x177   : > { %1012 = vst [vmem:[%s163_s16 + $0x10] sm:$0xff] %v1009_v32  ;;  %v1007_v35 = vmax.f32 %v1001_v30, %v1004_v33  ;;  %v1008_v36 = vmax.f32 %v1002_v31, %v1005_v34 }
 0x179   : > { %1010 = vst [vmem:[%s163_s16] sm:$0xff] %v1007_v35 }
 0x17a   : > { %1011 = vst [vmem:[%s163_s16 + $0x8] sm:$0xff] %v1008_v36 }
 0x17b   : > { %1240 = shalt.err (!%p1237_p3)
}
 0x17c   : > { %1163 = dma.vmem_to_hbm [thread:$0]  (%p1344_p5), %s1028_s27, 384, %s1030_s28, %s1014_s29  }
 0x17d PF: > { %p1169_p4 = scmp.ge.s32.totalorder %s1275_s15, 2  ;;  %s1041_s10 = sand.u32 1, %s1263_s12  }
 0x17e   : > { %s1042_s11 = scalar_lea.sflag [#allocation3], %s1041_s10 }
 0x17f   : > { %p1166_p7 = pnand %p1169_p4, %p1348_p6 }
 0x181   : > { %p1167_p8 = pneg %p1166_p7 }
 0x183   : > { %1258 = dma.done.wait (%p1167_p8), %s1042_s11, 384  }
 0x184   : > { %1260 = vsyncadd (%p1167_p8), %s1042_s11, 4294966912  ;;  %p13_p9 = scmp.ge.s32.totalorder %s1331_s18, 4   ;;  %s1534_s12 = smov %s1267_s13 }
 0x185   : > { %s1535_s13 = smov %s1271_s14  ;;  %s1536_s14 = smov %s1342_s21 }
 0x186   : > { %s1537_s15 = smov %s1331_s18  ;;  %15 = sbr.rel (!%p13_p9) target bundleno = 3 (0x3), region = 84 }
 0x18b   :  { %1048 = vsyncpa [#allocation3], 1 }
 0x18c   :  { %1050 = vsyncpa [#allocation3 + $0x1], 1 }

</bundles_post_ra>
